<compile_context>
chip_gen: v5e
topology: v5e:2x2
jax: 0.10.0
libtpu: 0.0.40
codegen_flags: <defaults>
</compile_context>

<pallas_src>
import jax
import jax.numpy as jnp
from jax.experimental import pallas as pl
from jax.experimental.pallas import tpu as pltpu


def mdn_mlp_kernel(x_ref, w1_ref, b1_ref, w2_ref, b2_ref, out_ref):
    """One lane-dense batch tile.

    x_ref  : (1, TM)   batch tile, batch on lanes
    w1_ref : (H, 1)    layer-1 weight column (PyTorch l1.weight is (H, 1))
    b1_ref : (H, 1)    layer-1 bias column
    w2_ref : (O, H)    layer-2 weight (PyTorch l2.weight layout)
    b2_ref : (O, 1)    layer-2 bias column
    out_ref: (O, TM)   transposed output tile (lane-dense)
    """
    x = x_ref[...]                                        # (1, TM)
    # Layer 1: K=1 matmul == outer product -> VPU, skip the MXU.
    h = w1_ref[...] * x + b1_ref[...]                     # (H,1)*(1,TM)+(H,1) -> (H,TM)
    h = jnp.maximum(h, 0.0)                               # ReLU
    # Layer 2: small (O,H) @ (H,TM) MXU matmul, f32 accumulation.
    out = jnp.dot(w2_ref[...], h, preferred_element_type=jnp.float32)
    out_ref[...] = out + b2_ref[...]                      # (O,TM) + (O,1)


def _round_up(a, b):
    return ((a + b - 1) // b) * b


def mdn_forward(x, params, output_size):
    """Reproduces LSTM.forward: x -> (mean, v, w).

    x: shape [m] (forward reshapes to [m, 1], i.e. input_size == 1).
    Returns each of (mean, v, w) with shape [m] when n_component == 1
    (PyTorch squeeze(dim=1)), otherwise [m, n_component].
    """
    w1, b1, w2, b2 = params                               # (H,1),(H,1),(O,H),(O,1)
    assert output_size % 3 == 0, "output_size must be 3 * n_component"
    m = int(x.shape[0])
    H = w1.shape[0]
    O = output_size
    n_component = output_size // 3

    # ---- lane-tile (TM) selection -------------------------------------------
    m128 = _round_up(m, 128)
    TM_CAP = 64 * 1024            # ~20-25 MB total VMEM at H=32; safe on v5e/v6e/v7x
    if m128 > TM_CAP:
        TM = TM_CAP
    elif m128 >= 16 * 1024:
        # Big enough batch: use >= 2 tiles so the "parallel" grid axis can be
        # sharded across v7x's two TensorCores.
        TM = _round_up(m128 // 2, 128)
    else:
        TM = m128
    m_pad = _round_up(m128, TM)

    # ---- explicit VMEM budget -----------------------------------------------
    # h (H, TM) f32 single-buffered  +  x/out tiles sublane-padded to 8 rows,
    # f32, double-buffered           +  matmul/bias epilogue temp.
    est_vmem = (4 * H + 2 * 8 * 4 + 2 * 8 * 4 + 8 * 4) * TM
    vmem_limit = int(min(max(est_vmem * 1.25 + (2 << 20), 16 << 20), 40 << 20))

    xf = x.astype(jnp.float32)
    if m_pad == m:
        x_row = xf.reshape(1, m_pad)                      # free: no extra HBM pass
    else:
        x_row = jnp.pad(xf, (0, m_pad - m)).reshape(1, m_pad)

    grid = (m_pad // TM,)
    out_t = pl.pallas_call(
        mdn_mlp_kernel,
        out_shape=jax.ShapeDtypeStruct((O, m_pad), jnp.float32),
        grid_spec=pltpu.PrefetchScalarGridSpec(
            num_scalar_prefetch=0,
            grid=grid,
            in_specs=[
                pl.BlockSpec((1, TM), lambda i: (0, i)),   # x tile (pipelined)
                pl.BlockSpec((H, 1), lambda i: (0, 0)),    # weights stay resident
                pl.BlockSpec((H, 1), lambda i: (0, 0)),
                pl.BlockSpec((O, H), lambda i: (0, 0)),
                pl.BlockSpec((O, 1), lambda i: (0, 0)),
            ],
            out_specs=pl.BlockSpec((O, TM), lambda i: (0, i)),
        ),
        compiler_params=pltpu.CompilerParams(
            dimension_semantics=("parallel",),             # shard batch tiles over TCs
            vmem_limit_bytes=vmem_limit),
    )(x_row, w1, b1, w2, b2)

    if n_component == 1:
        # torch squeeze(dim=1): each output is (m,). Rows are already
        # lane-dense -> no transpose needed at all.
        mean = out_t[0, :m]
        v = out_t[1, :m]
        w = out_t[2, :m]
    else:
        # Single fused transpose of the whole result (one HBM pass), then
        # cheap column slices.
        r_mt = out_t[:, :m].T                              # (m, O)
        mean = r_mt[:, 0:n_component]
        v = r_mt[:, n_component:2 * n_component]
        w = r_mt[:, 2 * n_component:3 * n_component]
    # NOTE: self.dropout is defined in __init__ but never applied in forward,
    # so it is intentionally omitted here.
    return mean, v, w


def init_params(key, input_size, hidden_size, output_size):
    """PyTorch-Linear-style uniform init U(-1/sqrt(fan_in), +), stored in the
    transposed-kernel layout: W1 (H,1), b1 (H,1), W2 (O,H), b2 (O,1)."""
    assert input_size == 1, "forward() does x.reshape([m, 1]) => input_size must be 1"
    k1, k2, k3, k4 = jax.random.split(key, 4)
    bound1 = 1.0 / jnp.sqrt(jnp.float32(input_size))
    bound2 = 1.0 / jnp.sqrt(jnp.float32(hidden_size))
    w1 = jax.random.uniform(k1, (hidden_size, input_size), jnp.float32, -bound1, bound1)
    b1 = jax.random.uniform(k2, (hidden_size, 1), jnp.float32, -bound1, bound1)
    w2 = jax.random.uniform(k3, (output_size, hidden_size), jnp.float32, -bound2, bound2)
    b2 = jax.random.uniform(k4, (output_size, 1), jnp.float32, -bound2, bound2)
    return w1, b1, w2, b2


def _reference(x, params):
    """Pure-JAX reference in the standard (m, feature) layout."""
    w1, b1, w2, b2 = params
    m = x.shape[0]
    h = jnp.maximum(x.reshape(m, 1) @ w1.T + b1.reshape(1, -1), 0.0)
    return h @ w2.T + b2.reshape(1, -1)                    # (m, O)


if __name__ == "__main__":
    key = jax.random.PRNGKey(0)
    input_size, hidden_size = 1, 32

    # Case 1: n_component == 1 (output_size = 3), m not a multiple of 128.
    output_size = 3
    m = 300
    k_params, k_x, key = jax.random.split(key, 3)
    params = init_params(k_params, input_size, hidden_size, output_size)
    x = jax.random.normal(k_x, (m,), jnp.float32)

    mean, v, w = mdn_forward(x, params, output_size)
    jax.block_until_ready((mean, v, w))

    r_ref = _reference(x, params)
    assert mean.shape == (m,) and v.shape == (m,) and w.shape == (m,)
    assert jnp.allclose(mean, r_ref[:, 0], atol=1e-5)
    assert jnp.allclose(v, r_ref[:, 1], atol=1e-5)
    assert jnp.allclose(w, r_ref[:, 2], atol=1e-5)

    # Case 2: n_component == 2 (output_size = 6) — squeeze(dim=1) is a no-op.
    output_size2 = 6
    m2 = 128
    k_params2, k_x2, key = jax.random.split(key, 3)
    params2 = init_params(k_params2, input_size, hidden_size, output_size2)
    x2 = jax.random.normal(k_x2, (m2,), jnp.float32)

    mean2, v2, w2o = mdn_forward(x2, params2, output_size2)
    jax.block_until_ready((mean2, v2, w2o))

    r_ref2 = _reference(x2, params2)
    assert mean2.shape == (m2, 2)
    assert jnp.allclose(mean2, r_ref2[:, 0:2], atol=1e-5)
    assert jnp.allclose(v2, r_ref2[:, 2:4], atol=1e-5)
    assert jnp.allclose(w2o, r_ref2[:, 4:6], atol=1e-5)

    # Case 3: batch large enough to split into >= 2 lane tiles (exercises the
    # multi-step grid / megacore path and the ragged-tail padding).
    output_size3 = 3
    m3 = 16500
    k_params3, k_x3, key = jax.random.split(key, 3)
    params3 = init_params(k_params3, input_size, hidden_size, output_size3)
    x3 = jax.random.normal(k_x3, (m3,), jnp.float32)

    mean3, v3, w3 = mdn_forward(x3, params3, output_size3)
    jax.block_until_ready((mean3, v3, w3))

    r_ref3 = _reference(x3, params3)
    assert mean3.shape == (m3,)
    assert jnp.allclose(mean3, r_ref3[:, 0], atol=1e-5)
    assert jnp.allclose(v3, r_ref3[:, 1], atol=1e-5)
    assert jnp.allclose(w3, r_ref3[:, 2], atol=1e-5)

    print("KERNEL_OK")
</pallas_src>

<mosaic_0001>
module attributes {stable_mosaic.version = 11 : i64} {
  func.func @mdn_mlp_kernel(%arg0: i32, %arg1: memref<1x384xf32, #tpu.memory_space<vmem>>, %arg2: memref<32x1xf32, #tpu.memory_space<vmem>>, %arg3: memref<32x1xf32, #tpu.memory_space<vmem>>, %arg4: memref<3x32xf32, #tpu.memory_space<vmem>>, %arg5: memref<3x1xf32, #tpu.memory_space<vmem>>, %arg6: memref<3x384xf32, #tpu.memory_space<vmem>>) attributes {dimension_semantics = [#tpu.dimension_semantics<parallel>], iteration_bounds = array<i64: 1>, scalar_prefetch = 0 : i64, scratch_operands = 0 : i64, tpu.core_type = #tpu.core_type<tc>, window_params = [{transform_indices = @transform_0, window_bounds = array<i64: 1, 384>}, {pipeline_mode = #tpu.pipeline_mode<synchronous>, transform_indices = @transform_1, window_bounds = array<i64: 32, 1>}, {pipeline_mode = #tpu.pipeline_mode<synchronous>, transform_indices = @transform_2, window_bounds = array<i64: 32, 1>}, {pipeline_mode = #tpu.pipeline_mode<synchronous>, transform_indices = @transform_3, window_bounds = array<i64: 3, 32>}, {pipeline_mode = #tpu.pipeline_mode<synchronous>, transform_indices = @transform_4, window_bounds = array<i64: 3, 1>}, {transform_indices = @transform_5, window_bounds = array<i64: 3, 384>}]} {
    %c0 = arith.constant 0 : index
    %c0_0 = arith.constant 0 : index
    %0 = vector.load %arg1[%c0, %c0_0] : memref<1x384xf32, #tpu.memory_space<vmem>>, vector<1x384xf32>
    %c0_1 = arith.constant 0 : index
    %c0_2 = arith.constant 0 : index
    %1 = vector.load %arg2[%c0_1, %c0_2] : memref<32x1xf32, #tpu.memory_space<vmem>>, vector<32x1xf32>
    %2 = vector.broadcast %1 : vector<32x1xf32> to vector<32x384xf32>
    %3 = vector.broadcast %0 : vector<1x384xf32> to vector<32x384xf32>
    %4 = arith.mulf %2, %3 : vector<32x384xf32>
    %c0_3 = arith.constant 0 : index
    %c0_4 = arith.constant 0 : index
    %5 = vector.load %arg3[%c0_3, %c0_4] : memref<32x1xf32, #tpu.memory_space<vmem>>, vector<32x1xf32>
    %6 = vector.broadcast %5 : vector<32x1xf32> to vector<32x384xf32>
    %7 = arith.addf %4, %6 : vector<32x384xf32>
    %cst = arith.constant 0.000000e+00 : f32
    %8 = vector.broadcast %cst : f32 to vector<32x384xf32>
    %9 = arith.maximumf %7, %8 : vector<32x384xf32>
    %c0_5 = arith.constant 0 : index
    %c0_6 = arith.constant 0 : index
    %10 = vector.load %arg4[%c0_5, %c0_6] : memref<3x32xf32, #tpu.memory_space<vmem>>, vector<3x32xf32>
    %cst_7 = arith.constant dense<0.000000e+00> : vector<3x384xf32>
    %11 = tpu.matmul %10, %9, %cst_7 {dimension_numbers = #tpu.dot_dimension_numbers<[1], [0], [0], [1], [0, 0, 1, 1], [], []>} : vector<3x32xf32>, vector<32x384xf32>, vector<3x384xf32> -> vector<3x384xf32>
    %c0_8 = arith.constant 0 : index
    %c0_9 = arith.constant 0 : index
    %12 = vector.load %arg5[%c0_8, %c0_9] : memref<3x1xf32, #tpu.memory_space<vmem>>, vector<3x1xf32>
    %13 = vector.broadcast %12 : vector<3x1xf32> to vector<3x384xf32>
    %14 = arith.addf %11, %13 : vector<3x384xf32>
    %c0_10 = arith.constant 0 : index
    %c0_11 = arith.constant 0 : index
    %15 = vector.load %arg6[%c0_10, %c0_11] : memref<3x384xf32, #tpu.memory_space<vmem>>, vector<3x384xf32>
    tpu.vector_store %arg6[%c0_10, %c0_11], %14 {strides = array<i32>} : memref<3x384xf32, #tpu.memory_space<vmem>>, vector<3x384xf32>,
    return
  }
  func.func @transform_0(%arg0: i32) -> (i32, i32) {
    %c0_i32 = arith.constant 0 : i32
    %c0_i32_0 = arith.constant 0 : i32
    return %c0_i32, %arg0 : i32, i32
  }
  func.func @transform_1(%arg0: i32) -> (i32, i32) {
    %c0_i32 = arith.constant 0 : i32
    %c0_i32_0 = arith.constant 0 : i32
    %c0_i32_1 = arith.constant 0 : i32
    return %c0_i32, %c0_i32_0 : i32, i32
  }
  func.func @transform_2(%arg0: i32) -> (i32, i32) {
    %c0_i32 = arith.constant 0 : i32
    %c0_i32_0 = arith.constant 0 : i32
    %c0_i32_1 = arith.constant 0 : i32
    return %c0_i32, %c0_i32_0 : i32, i32
  }
  func.func @transform_3(%arg0: i32) -> (i32, i32) {
    %c0_i32 = arith.constant 0 : i32
    %c0_i32_0 = arith.constant 0 : i32
    %c0_i32_1 = arith.constant 0 : i32
    return %c0_i32, %c0_i32_0 : i32, i32
  }
  func.func @transform_4(%arg0: i32) -> (i32, i32) {
    %c0_i32 = arith.constant 0 : i32
    %c0_i32_0 = arith.constant 0 : i32
    %c0_i32_1 = arith.constant 0 : i32
    return %c0_i32, %c0_i32_0 : i32, i32
  }
  func.func @transform_5(%arg0: i32) -> (i32, i32) {
    %c0_i32 = arith.constant 0 : i32
    %c0_i32_0 = arith.constant 0 : i32
    return %c0_i32, %arg0 : i32, i32
  }
}

</mosaic_0001>

<bundles_post_ra>
// kernel: tpu_custom_call.1
= control target key start
LH: loop header
LB: loop body
LE: loop exit
PB: predicated region body
PF: predicated region fallthrough
CT: control target
= control target key end

     0   :  { %v242_v2 = vmov 0   ;;  %s310_s0 = inlined_call_operand.vmem [shape: f32[1,384], index: 0, kind: input, shape index: {}]   ;;  %s311_s1 = inlined_call_operand.vmem [shape: f32[32,1], index: 1, kind: input, shape index: {}]   ;;  %s312_s2 = inlined_call_operand.vmem [shape: f32[32,1], index: 2, kind: input, shape index: {}]   ;;  %s313_s3 = inlined_call_operand.vmem [shape: f32[3,32], index: 3, kind: input, shape index: {}]   ;;  %s314_s4 = inlined_call_operand.vmem [shape: f32[3,1], index: 4, kind: input, shape index: {}]   ;;  %s315_s5 = inlined_call_operand.hbm [shape: f32[3,384], index: 5, kind: output, shape index: {}]  }
   0x1   :  { %v68_v0 = vld [vmem:[%s312_s2 + $0x18] sm:$0xff]  ;;  %214 = vset.pattern.permute.xlu1 %v242_v2  ;;  %213 = vset.pattern.permute.xlu0 %v242_v2  ;;  %v67_v3 = vld [vmem:[%s312_s2 + $0x10] sm:$0xff] }
   0x2   :  { %v25_v1 = vld [vmem:[%s311_s1 + $0x18] sm:$0xff]  ;;  %86 = vperm.xlu1 %214, %v68_v0   ;;  %215 = vset.pattern.permute.xlu2 %v242_v2 }
   0x3   :  { %43 = vperm.xlu0 %213, %v25_v1  }
   0x4   :  { %10 = vsyncpa [#allocation3], 0  ;;  %81 = vperm.xlu2 %215, %v67_v3   ;;  %v24_v4 = vld [vmem:[%s311_s1 + $0x10] sm:$0xff]  ;;  %v23_v5 = vld [vmem:[%s311_s1 + $0x8] sm:$0xff]  ;;  %vm120_vm0 = vcmask 261120   ;;  %vm187_vm1 = vcmask 1043456  }
   0x5   :  { %v22_v6 = vld [vmem:[%s311_s1] sm:$0xff]  ;;  %v66_v7 = vld [vmem:[%s312_s2 + $0x8] sm:$0xff]  ;;  %s199_s14 = sshll.u32 %s315_s5, 4  ;;  %s200_s14 = int_to_ptr.hbm [resolvable:$true] %s199_s14 }
   0x6   :  { %v65_v8 = vld [vmem:[%s312_s2] sm:$0xff] }
   0x7   :  { %v114_v9 = vld [vmem:[%s314_s4] sm:$0x7]  ;;  %s243_s4 = smov [#allocation2]  }
   0x8   :  { %v21_v10 = vld [vmem:[%s310_s0] sm:$0x7]  ;;  %s197_s12 = sshll.u32 %s243_s4, 4  ;;  %s198_s12 = int_to_ptr.vmem [resolvable:$true] %s197_s12 }
   0x9   :  { %v47_v11 = vperm.slane %v21_v10, 0  ;;  %v48_v12 = vperm.slane %v21_v10, 1  ;;  %v49_v13 = vperm.slane %v21_v10, 2  ;;  %v113_v57 = vld [vmem:[%s313_s3] sm:$0x7] }
   0xa   :  { %33 = vperm.xlu1 %214, %v23_v5  }
   0xb   :  { %38 = vperm.xlu0 %213, %v24_v4  }
   0xc   :  { %28 = vperm.xlu2 %215, %v22_v6  }
  0x12   :  { %71 = vperm.xlu1 %214, %v65_v8  }
  0x13   :  { %76 = vperm.xlu0 %213, %v66_v7  }
  0x14   :  { %117 = vperm.xlu2 %215, %v114_v9  }
  0x5e   :  { %v82_v19 = vpop.permute.xlu2 %81 }
  0x66   :  { %v29_v34 = vpop.permute.xlu2 %28 }
  0x67   :  { %v53_v38 = vmul.f32 %v47_v11, %v29_v34  ;;  %v54_v42 = vmul.f32 %v48_v12, %v29_v34  ;;  %v55_v43 = vmul.f32 %v49_v13, %v29_v34 }
  0x6e   :  { %v118_v59 = vpop.permute.xlu2 %117 }
  0x74   :  { %v87_v14 = vpop.permute.xlu1 %86 }
  0x75   :  { %v44_v15 = vpop.permute.xlu0 %43 }
  0x76   :  { %v62_v16 = vmul.f32 %v47_v11, %v44_v15  ;;  %v63_v17 = vmul.f32 %v48_v12, %v44_v15  ;;  %v64_v18 = vmul.f32 %v49_v13, %v44_v15 }
  0x78   :  { %v98_v20 = vadd.f32 %v87_v14, %v62_v16  ;;  %v99_v21 = vadd.f32 %v87_v14, %v63_v17  ;;  %v100_v22 = vadd.f32 %v87_v14, %v64_v18 }
  0x7a   :  { %v110_v23 = vmax.f32 %v98_v20, 0.0  ;;  %v111_v24 = vmax.f32 %v99_v21, 0.0  ;;  %v112_v25 = vmax.f32 %v100_v22, 0.0 }
  0x7c   :  { %136 = vmatpush.msra.mxu0 %v110_v23  ;;  %156 = vmatpush.msra.mxu1 %v111_v24  ;;  %v34_v27 = vpop.permute.xlu1 %33 }
  0x7d   :  { %176 = vmatpush.msra.mxu2 %v112_v25  ;;  %v39_v26 = vpop.permute.xlu0 %38  ;;  %v56_v39 = vmul.f32 %v47_v11, %v34_v27  ;;  %v57_v40 = vmul.f32 %v48_v12, %v34_v27  ;;  %v58_v41 = vmul.f32 %v49_v13, %v34_v27 }
  0x7e   :  { %v59_v28 = vmul.f32 %v47_v11, %v39_v26  ;;  %v60_v29 = vmul.f32 %v48_v12, %v39_v26  ;;  %v61_v30 = vmul.f32 %v49_v13, %v39_v26 }
  0x80   :  { %v95_v31 = vadd.f32 %v82_v19, %v59_v28  ;;  %v96_v32 = vadd.f32 %v82_v19, %v60_v29  ;;  %v97_v33 = vadd.f32 %v82_v19, %v61_v30 }
  0x82   :  { %v107_v35 = vmax.f32 %v95_v31, 0.0  ;;  %v108_v36 = vmax.f32 %v96_v32, 0.0  ;;  %v109_v37 = vmax.f32 %v97_v33, 0.0 }
  0x84   :  { %137 = vmatpush.msra.mxu0 %v107_v35  ;;  %157 = vmatpush.msra.mxu1 %v108_v36  ;;  %v72_v45 = vpop.permute.xlu1 %71 }
  0x85   :  { %177 = vmatpush.msra.mxu2 %v109_v37  ;;  %v77_v44 = vpop.permute.xlu0 %76  ;;  %v89_v49 = vadd.f32 %v72_v45, %v53_v38  ;;  %v90_v50 = vadd.f32 %v72_v45, %v54_v42  ;;  %v91_v51 = vadd.f32 %v72_v45, %v55_v43 }
  0x86   :  { %v92_v46 = vadd.f32 %v77_v44, %v56_v39  ;;  %v93_v47 = vadd.f32 %v77_v44, %v57_v40  ;;  %v94_v48 = vadd.f32 %v77_v44, %v58_v41 }
  0x87   :  { %v101_v55 = vmax.f32 %v89_v49, 0.0  ;;  %v102_v56 = vmax.f32 %v90_v50, 0.0  ;;  %v103_v58 = vmax.f32 %v91_v51, 0.0 }
  0x88   :  { %v104_v52 = vmax.f32 %v92_v46, 0.0  ;;  %v105_v53 = vmax.f32 %v93_v47, 0.0  ;;  %v106_v54 = vmax.f32 %v94_v48, 0.0 }
  0x8a   :  { %138 = vmatpush.msra.mxu0 %v104_v52  ;;  %158 = vmatpush.msra.mxu1 %v105_v53 }
  0x8b   :  { %178 = vmatpush.msra.mxu2 %v106_v54 }
  0x8c   :  { %139 = vmatpush.msra.mxu0 %v101_v55  ;;  %159 = vmatpush.msra.mxu1 %v102_v56 }
  0x8d   :  { %179 = vmatpush.msra.mxu2 %v103_v58  ;;  %208 = vmatmul.msk.f32.vlgmr.msra.gmra.mxu0 %vm120_vm0, %v113_v57 }
  0x8e   :  { %209 = vmatmul.msk.f32.vlgmr.msra.gmra.mxu1 %vm120_vm0, %v113_v57  ;;  %210 = vmatmul.msk.f32.vlgmr.msra.gmra.mxu2 %vm120_vm0, %v113_v57 }
 0x10a   :  { %v141_v60 = vpop.f32.mrf.mxu0 }
 0x10b   :  { %v161_v61 = vpop.f32.mrf.mxu1  ;;  %v142_v63 = vadd.f32 %v141_v60, %v118_v59 }
 0x10c   :  { %v162_v62 = vadd.f32 %v161_v61, %v118_v59 }
 0x10e   :  { %v186_v0 = vrot.slane %v162_v62, 4 }
 0x110   :  { %v188_v1 = vsel %vm187_vm1, %v142_v63, %v186_v0 }
 0x111   :  { %190 = vst [vmem:[#allocation2] sm:$0x77] %v188_v1  ;;  %v181_v2 = vpop.f32.mrf.mxu2 }
 0x112   :  { %v182_v3 = vadd.f32 %v181_v2, %v118_v59 }
 0x114   :  { %191 = vst [vmem:[#allocation2 + $0x8] sm:$0x7] %v182_v3 }
 0x115   :  { %202 = dma.vmem_to_hbm [thread:$0]  %s198_s12, 192, %s200_s14, [#allocation3]  }
 0x116   :  { %240 = dma.done.wait [#allocation3], 192  }
 0x117   :  { %241 = vsyncadd [#allocation3], 4294967104 }
 0x118   :  { %207 = vsyncpa [#allocation3], 1 }

</bundles_post_ra>
